<compile_context>
chip_gen: v6e
topology: v6e:2x2x1
jax: 0.10.0
libtpu: 0.0.40
codegen_flags: <defaults>
</compile_context>

<pallas_src>
import math

import jax
import jax.numpy as jnp
from jax.experimental import pallas as pl
from jax.experimental.pallas import tpu as pltpu

# ----------------------------- config ---------------------------------------
B, S, H, F, V, C = 2, 8, 32, 64, 100, 6   # batch, seq, hidden, ffn, vocab, labels
BS = B * S                                 # flattened tokens (16)
CPAD = 128                                 # lane-dense padded width
OUT_ROWS = 8                               # sublane-padded output rows
EPS = 1e-5

# bf16 weight slab: rows 0:H = wq|wk|wv at 128-lane slots; rows H:2H = wo|w1|head;
# rows 2H:2H+F = w2.
WLANES = 3 * CPAD                          # 384
WROWS = 2 * H + F                          # 128

# f32 aux slab layout (width CPAD):
#   rows 0:16   attention bias (BS, BS)      lanes 0:BS
#   rows 16:24  pooling mask, padded to 8    lanes 0:BS
#   rows 24:35  11 small bias / LN vectors   lanes 0:width
R_BIAS, R_POOL, R_VEC = 0, 16, 24
AUX_ROWS = 40
(R_BQ, R_BK, R_BV, R_BO, R_LN1G, R_LN1B,
 R_LN2G, R_LN2B, R_B1, R_B2, R_HB) = range(11)


def _gelu(x):
    # tanh approximation of GELU (EUP-friendly); same in kernel and reference
    return 0.5 * x * (1.0 + jnp.tanh(0.7978845608028654 * (x + 0.044715 * x * x * x)))


def _layernorm(x, g, b):
    mu = jnp.mean(x, axis=-1, keepdims=True)
    var = jnp.mean((x - mu) ** 2, axis=-1, keepdims=True)
    return (x - mu) * jax.lax.rsqrt(var + EPS) * g + b


# ----------------------------- kernel ---------------------------------------
def feedback_kernel(x_ref, aux_ref, w_ref, out_ref):
    bf16 = jnp.bfloat16
    x = x_ref[...]                                            # (BS, H) f32

    # ---- static, tile-aligned views of the packed operands ----
    attn_bias = aux_ref[R_BIAS:R_BIAS + BS, 0:BS]             # (BS, BS)  0 / -1e9
    poolm = aux_ref[R_POOL:R_POOL + OUT_ROWS, 0:BS]           # (8, BS)   rows >= B are 0
    vecs = aux_ref[R_VEC:R_VEC + 16, :]                       # (16, CPAD)
    vec = lambda r, n: vecs[r:r + 1, 0:n]
    bq, bk, bv = vec(R_BQ, H), vec(R_BK, H), vec(R_BV, H)
    bo = vec(R_BO, H)
    ln1g, ln1b = vec(R_LN1G, H), vec(R_LN1B, H)
    ln2g, ln2b = vec(R_LN2G, H), vec(R_LN2B, H)
    b1, b2 = vec(R_B1, F), vec(R_B2, H)
    hb = vecs[R_HB:R_HB + 1, :]                               # (1, CPAD), zero past C

    w_qkv = w_ref[0:H, :]                                     # (H, 384) q|k|v lane slots
    w_o = w_ref[H:2 * H, 0:H]                                 # (H, H)
    w_1 = w_ref[H:2 * H, 128:128 + F]                         # (H, F)
    w_hd = w_ref[H:2 * H, 256:256 + CPAD]                     # (H, CPAD)
    w_2 = w_ref[2 * H:2 * H + F, 0:H]                         # (F, H)

    # ---- body: pre-LN self-attention (fused, lane-aligned QKV projection) ----
    xn = _layernorm(x, ln1g, ln1b)
    qkv = jnp.dot(xn.astype(bf16), w_qkv,
                  preferred_element_type=jnp.float32)         # (BS, 384)
    q = qkv[:, 0:H] + bq                                      # lane-tile 0
    k = qkv[:, 128:128 + H] + bk                              # lane-tile 1
    v = qkv[:, 256:256 + H] + bv                              # lane-tile 2

    # q @ k^T in f32 (no bf16 casts on the pure in-kernel chain)
    scores = jax.lax.dot_general(
        q, k, (((1,), (1,)), ((), ())),
        preferred_element_type=jnp.float32) * (1.0 / math.sqrt(H))
    scores = scores + attn_bias                               # block-diag + key padding
    scores = scores - jnp.max(scores, axis=-1, keepdims=True)
    p = jnp.exp(scores)
    p = p / jnp.sum(p, axis=-1, keepdims=True)                # exact reciprocal

    ctx = jnp.dot(p, v, preferred_element_type=jnp.float32)   # (BS, H) f32
    attn = jnp.dot(ctx.astype(bf16), w_o,
                   preferred_element_type=jnp.float32) + bo
    h = x + attn

    # ---- body: pre-LN feed-forward ----
    hn = _layernorm(h, ln2g, ln2b)
    ff = _gelu(jnp.dot(hn.astype(bf16), w_1,
                       preferred_element_type=jnp.float32) + b1)
    ff = jnp.dot(ff.astype(bf16), w_2,
                 preferred_element_type=jnp.float32) + b2
    h = h + ff                                                # (BS, H) last_hidden_state

    # ---- pooler: masked mean as an MXU dot (8 padded rows -> full vreg) ----
    denom = jnp.maximum(jnp.sum(poolm, axis=-1, keepdims=True), 1e-9)
    pooled = jnp.dot(poolm, h, preferred_element_type=jnp.float32) / denom  # (8, H)

    # ---- head: linear -> lane-dense logits, single unmasked (8,128) store ----
    logits = jnp.dot(pooled.astype(bf16), w_hd,
                     preferred_element_type=jnp.float32) + hb
    out_ref[...] = logits


# ----------------------- one-time operand packing ----------------------------
def pack_weights(params):
    """Hoisted out of the forward pass: all matmul weights -> one bf16 slab."""
    bf = jnp.bfloat16
    w = jnp.zeros((WROWS, WLANES), bf)
    w = w.at[0:H, 0:H].set(params["wq"].astype(bf))
    w = w.at[0:H, 128:128 + H].set(params["wk"].astype(bf))
    w = w.at[0:H, 256:256 + H].set(params["wv"].astype(bf))
    w = w.at[H:2 * H, 0:H].set(params["wo"].astype(bf))
    w = w.at[H:2 * H, 128:128 + F].set(params["w1"].astype(bf))
    w = w.at[H:2 * H, 256:256 + C].set(params["hw"].astype(bf))
    w = w.at[2 * H:2 * H + F, 0:H].set(params["w2"].astype(bf))
    return w


def pack_aux(params, attention_mask):
    """Hoisted out of the forward pass: mask-derived operands + small vectors."""
    mask = attention_mask.astype(jnp.float32)                 # (B, S)
    eye_b = jnp.eye(B, dtype=jnp.float32)
    allowed = eye_b[:, :, None] * mask[None, :, :]            # (B, B, S)
    # additive attention bias over flattened tokens: 0 where allowed, -1e9 otherwise
    attn_bias = (jnp.broadcast_to(allowed[:, None, :, :], (B, S, B, S))
                 .reshape(BS, BS) - 1.0) * 1e9                # (BS, BS)
    poolm = allowed.reshape(B, BS)                            # (B, BS) 0/1

    aux = jnp.zeros((AUX_ROWS, CPAD), jnp.float32)
    aux = aux.at[R_BIAS:R_BIAS + BS, 0:BS].set(attn_bias)
    aux = aux.at[R_POOL:R_POOL + B, 0:BS].set(poolm)          # rows B..7 stay zero

    rows = [params["bq"], params["bk"], params["bv"], params["bo"],
            params["ln1g"], params["ln1b"], params["ln2g"], params["ln2b"],
            params["b1"], params["b2"], params["hb"]]
    for r, vrow in enumerate(rows):
        vrow = vrow.reshape(-1).astype(jnp.float32)
        aux = aux.at[R_VEC + r, 0:vrow.shape[0]].set(vrow)
    return aux


# ----------------------------- forward ---------------------------------------
@jax.jit
def feedback_forward(input_ids, emb, aux, wslab):
    # glue (plain JAX): embedding gather only — everything else is pre-packed
    x = emb[input_ids].reshape(BS, H).astype(jnp.float32)     # (B*S, H)
    logits_pad = pl.pallas_call(
        feedback_kernel,
        out_shape=jax.ShapeDtypeStruct((OUT_ROWS, CPAD), jnp.float32),
        in_specs=[
            pl.BlockSpec(memory_space=pltpu.MemorySpace.VMEM),   # x
            pl.BlockSpec(memory_space=pltpu.MemorySpace.VMEM),   # aux slab
            pl.BlockSpec(memory_space=pltpu.MemorySpace.VMEM),   # weight slab
        ],
        out_specs=pl.BlockSpec(memory_space=pltpu.MemorySpace.VMEM),
    )(x, aux, wslab)
    return logits_pad[:B, :C]


# -------------------------- pure-JAX reference --------------------------------
def feedback_ref(input_ids, attention_mask, p):
    x = p["emb"][input_ids]
    mask = attention_mask.astype(jnp.float32)
    f32 = lambda a: a.astype(jnp.float32)
    wq, wk, wv, wo = f32(p["wq"]), f32(p["wk"]), f32(p["wv"]), f32(p["wo"])
    w1, w2, hw = f32(p["w1"]), f32(p["w2"]), f32(p["hw"])

    def one(xb, mb):
        xn = _layernorm(xb, p["ln1g"], p["ln1b"])
        q = xn @ wq + p["bq"]; k = xn @ wk + p["bk"]; v = xn @ wv + p["bv"]
        s = q @ k.T / math.sqrt(H) + (mb[None, :] - 1.0) * 1e9
        a = jax.nn.softmax(s, axis=-1)
        h = xb + (a @ v) @ wo + p["bo"]
        hn = _layernorm(h, p["ln2g"], p["ln2b"])
        h = h + _gelu(hn @ w1 + p["b1"]) @ w2 + p["b2"]
        pooled = jnp.sum(h * mb[:, None], axis=0) / jnp.maximum(jnp.sum(mb), 1e-9)
        return pooled @ hw + p["hb"][0]

    return jax.vmap(one)(x, mask)


# ------------------------------- params ----------------------------------------
def init_params(key):
    # Matmul weights are stored in bf16 (MXU-native on v6e/v7x); biases, LN
    # params and the embedding stay f32. The f32 reference uses the same bf16
    # weights (upcast), so the comparison isolates kernel arithmetic.
    ks = jax.random.split(key, 8)
    sc = lambda fan: 1.0 / math.sqrt(fan)
    bf = jnp.bfloat16
    return {
        "emb": jax.random.normal(ks[0], (V, H), jnp.float32) * 0.02,
        "wq": (jax.random.normal(ks[1], (H, H), jnp.float32) * sc(H)).astype(bf),
        "bq": jnp.zeros((1, H), jnp.float32),
        "wk": (jax.random.normal(ks[2], (H, H), jnp.float32) * sc(H)).astype(bf),
        "bk": jnp.zeros((1, H), jnp.float32),
        "wv": (jax.random.normal(ks[3], (H, H), jnp.float32) * sc(H)).astype(bf),
        "bv": jnp.zeros((1, H), jnp.float32),
        "wo": (jax.random.normal(ks[4], (H, H), jnp.float32) * sc(H)).astype(bf),
        "bo": jnp.zeros((1, H), jnp.float32),
        "ln1g": jnp.ones((1, H), jnp.float32),
        "ln1b": jnp.zeros((1, H), jnp.float32),
        "ln2g": jnp.ones((1, H), jnp.float32),
        "ln2b": jnp.zeros((1, H), jnp.float32),
        "w1": (jax.random.normal(ks[5], (H, F), jnp.float32) * sc(H)).astype(bf),
        "b1": jnp.zeros((1, F), jnp.float32),
        "w2": (jax.random.normal(ks[6], (F, H), jnp.float32) * sc(F)).astype(bf),
        "b2": jnp.zeros((1, H), jnp.float32),
        "hw": (jax.random.normal(ks[7], (H, C), jnp.float32) * sc(H)).astype(bf),
        "hb": jnp.zeros((1, C), jnp.float32),
    }


# ------------------------------- main -----------------------------------------
if __name__ == "__main__":
    key = jax.random.PRNGKey(0)
    kp, ki = jax.random.split(key)
    params = init_params(kp)

    input_ids = jax.random.randint(ki, (B, S), 0, V, dtype=jnp.int32)
    # last two positions of batch element 1 are padding
    attention_mask = jnp.array(
        [[1] * S, [1] * (S - 2) + [0, 0]], dtype=jnp.int32
    )

    # One-time packing (hoisted out of the per-call forward pass).
    wslab = pack_weights(params)
    aux = pack_aux(params, attention_mask)

    logits = feedback_forward(input_ids, params["emb"], aux, wslab)
    jax.block_until_ready(logits)

    ref = feedback_ref(input_ids, attention_mask, params)
    assert logits.shape == (B, C)
    # discrepancy sources: bf16 casts of activations feeding bf16-weight dots (<~1%)
    assert jnp.allclose(logits, ref, rtol=2e-2, atol=2e-2)

    print("KERNEL_OK")
</pallas_src>

<mosaic_0001>
module attributes {stable_mosaic.version = 11 : i64} {
  func.func @feedback_kernel(%arg0: memref<16x32xf32, #tpu.memory_space<vmem>>, %arg1: memref<40x128xf32, #tpu.memory_space<vmem>>, %arg2: memref<128x384xbf16, #tpu.memory_space<vmem>>, %arg3: memref<8x128xf32, #tpu.memory_space<vmem>>) attributes {dimension_semantics = [], scalar_prefetch = 0 : i64, scratch_operands = 0 : i64, tpu.core_type = #tpu.core_type<tc>} {
    %c0 = arith.constant 0 : index
    %c0_0 = arith.constant 0 : index
    %0 = vector.load %arg0[%c0, %c0_0] : memref<16x32xf32, #tpu.memory_space<vmem>>, vector<16x32xf32>
    %c0_1 = arith.constant 0 : index
    %c0_2 = arith.constant 0 : index
    %1 = vector.load %arg1[%c0_1, %c0_2] : memref<40x128xf32, #tpu.memory_space<vmem>>, vector<16x16xf32>
    %c16 = arith.constant 16 : index
    %c0_3 = arith.constant 0 : index
    %2 = vector.load %arg1[%c16, %c0_3] : memref<40x128xf32, #tpu.memory_space<vmem>>, vector<8x16xf32>
    %c24 = arith.constant 24 : index
    %c0_4 = arith.constant 0 : index
    %3 = vector.load %arg1[%c24, %c0_4] : memref<40x128xf32, #tpu.memory_space<vmem>>, vector<16x128xf32>
    %4 = vector.extract_strided_slice %3 {offsets = [0, 0], sizes = [1, 32], strides = [1, 1]} : vector<16x128xf32> to vector<1x32xf32>
    %5 = vector.extract_strided_slice %3 {offsets = [1, 0], sizes = [1, 32], strides = [1, 1]} : vector<16x128xf32> to vector<1x32xf32>
    %6 = vector.extract_strided_slice %3 {offsets = [2, 0], sizes = [1, 32], strides = [1, 1]} : vector<16x128xf32> to vector<1x32xf32>
    %7 = vector.extract_strided_slice %3 {offsets = [3, 0], sizes = [1, 32], strides = [1, 1]} : vector<16x128xf32> to vector<1x32xf32>
    %8 = vector.extract_strided_slice %3 {offsets = [4, 0], sizes = [1, 32], strides = [1, 1]} : vector<16x128xf32> to vector<1x32xf32>
    %9 = vector.extract_strided_slice %3 {offsets = [5, 0], sizes = [1, 32], strides = [1, 1]} : vector<16x128xf32> to vector<1x32xf32>
    %10 = vector.extract_strided_slice %3 {offsets = [6, 0], sizes = [1, 32], strides = [1, 1]} : vector<16x128xf32> to vector<1x32xf32>
    %11 = vector.extract_strided_slice %3 {offsets = [7, 0], sizes = [1, 32], strides = [1, 1]} : vector<16x128xf32> to vector<1x32xf32>
    %12 = vector.extract_strided_slice %3 {offsets = [8, 0], sizes = [1, 64], strides = [1, 1]} : vector<16x128xf32> to vector<1x64xf32>
    %13 = vector.extract_strided_slice %3 {offsets = [9, 0], sizes = [1, 32], strides = [1, 1]} : vector<16x128xf32> to vector<1x32xf32>
    %14 = vector.extract_strided_slice %3 {offsets = [10, 0], sizes = [1, 128], strides = [1, 1]} : vector<16x128xf32> to vector<1x128xf32>
    %c0_5 = arith.constant 0 : index
    %c0_6 = arith.constant 0 : index
    %15 = vector.load %arg2[%c0_5, %c0_6] : memref<128x384xbf16, #tpu.memory_space<vmem>>, vector<32x384xbf16>
    %c32 = arith.constant 32 : index
    %c0_7 = arith.constant 0 : index
    %16 = vector.load %arg2[%c32, %c0_7] : memref<128x384xbf16, #tpu.memory_space<vmem>>, vector<32x32xbf16>
    %c32_8 = arith.constant 32 : index
    %c128 = arith.constant 128 : index
    %17 = vector.load %arg2[%c32_8, %c128] : memref<128x384xbf16, #tpu.memory_space<vmem>>, vector<32x64xbf16>
    %c32_9 = arith.constant 32 : index
    %c256 = arith.constant 256 : index
    %18 = vector.load %arg2[%c32_9, %c256] : memref<128x384xbf16, #tpu.memory_space<vmem>>, vector<32x128xbf16>
    %c64 = arith.constant 64 : index
    %c0_10 = arith.constant 0 : index
    %19 = vector.load %arg2[%c64, %c0_10] : memref<128x384xbf16, #tpu.memory_space<vmem>>, vector<64x32xbf16>
    %cst = arith.constant dense<0.000000e+00> : vector<16xf32>
    %20 = vector.multi_reduction <add>, %0, %cst [1] : vector<16x32xf32> to vector<16xf32>
    %21 = vector.shape_cast %20 : vector<16xf32> to vector<16x1xf32>
    %cst_11 = arith.constant 3.200000e+01 : f32
    %22 = vector.broadcast %cst_11 : f32 to vector<16x1xf32>
    %23 = arith.divf %21, %22 : vector<16x1xf32>
    %24 = vector.broadcast %23 : vector<16x1xf32> to vector<16x32xf32>
    %25 = arith.subf %0, %24 : vector<16x32xf32>
    %26 = arith.mulf %25, %25 : vector<16x32xf32>
    %cst_12 = arith.constant dense<0.000000e+00> : vector<16xf32>
    %27 = vector.multi_reduction <add>, %26, %cst_12 [1] : vector<16x32xf32> to vector<16xf32>
    %28 = vector.shape_cast %27 : vector<16xf32> to vector<16x1xf32>
    %cst_13 = arith.constant 3.200000e+01 : f32
    %29 = vector.broadcast %cst_13 : f32 to vector<16x1xf32>
    %30 = arith.divf %28, %29 : vector<16x1xf32>
    %31 = vector.broadcast %23 : vector<16x1xf32> to vector<16x32xf32>
    %32 = arith.subf %0, %31 : vector<16x32xf32>
    %cst_14 = arith.constant 9.99999974E-6 : f32
    %33 = vector.broadcast %cst_14 : f32 to vector<16x1xf32>
    %34 = arith.addf %30, %33 : vector<16x1xf32>
    %35 = math.rsqrt %34 : vector<16x1xf32>
    %36 = vector.broadcast %35 : vector<16x1xf32> to vector<16x32xf32>
    %37 = arith.mulf %32, %36 : vector<16x32xf32>
    %38 = vector.broadcast %8 : vector<1x32xf32> to vector<16x32xf32>
    %39 = arith.mulf %37, %38 : vector<16x32xf32>
    %40 = vector.broadcast %9 : vector<1x32xf32> to vector<16x32xf32>
    %41 = arith.addf %39, %40 : vector<16x32xf32>
    %42 = arith.truncf %41 : vector<16x32xf32> to vector<16x32xbf16>
    %cst_15 = arith.constant dense<0.000000e+00> : vector<16x384xf32>
    %43 = tpu.matmul %42, %15, %cst_15 {dimension_numbers = #tpu.dot_dimension_numbers<[1], [0], [0], [1], [0, 0, 1, 1], [], []>} : vector<16x32xbf16>, vector<32x384xbf16>, vector<16x384xf32> -> vector<16x384xf32>
    %44 = vector.extract_strided_slice %43 {offsets = [0, 0], sizes = [16, 32], strides = [1, 1]} : vector<16x384xf32> to vector<16x32xf32>
    %45 = vector.broadcast %4 : vector<1x32xf32> to vector<16x32xf32>
    %46 = arith.addf %44, %45 : vector<16x32xf32>
    %47 = vector.extract_strided_slice %43 {offsets = [0, 128], sizes = [16, 32], strides = [1, 1]} : vector<16x384xf32> to vector<16x32xf32>
    %48 = vector.broadcast %5 : vector<1x32xf32> to vector<16x32xf32>
    %49 = arith.addf %47, %48 : vector<16x32xf32>
    %50 = vector.extract_strided_slice %43 {offsets = [0, 256], sizes = [16, 32], strides = [1, 1]} : vector<16x384xf32> to vector<16x32xf32>
    %51 = vector.broadcast %6 : vector<1x32xf32> to vector<16x32xf32>
    %52 = arith.addf %50, %51 : vector<16x32xf32>
    %cst_16 = arith.constant dense<0.000000e+00> : vector<16x16xf32>
    %53 = tpu.matmul %46, %49, %cst_16 {dimension_numbers = #tpu.dot_dimension_numbers<[1], [1], [0], [0], [0, 0, 1, 0], [], []>} : vector<16x32xf32>, vector<16x32xf32>, vector<16x16xf32> -> vector<16x16xf32>
    %cst_17 = arith.constant 0.176776692 : f32
    %54 = vector.broadcast %cst_17 : f32 to vector<16x16xf32>
    %55 = arith.mulf %53, %54 : vector<16x16xf32>
    %56 = arith.addf %55, %1 : vector<16x16xf32>
    %cst_18 = arith.constant dense<0xFF800000> : vector<16xf32>
    %57 = vector.multi_reduction <maximumf>, %56, %cst_18 [1] : vector<16x16xf32> to vector<16xf32>
    %58 = vector.shape_cast %57 : vector<16xf32> to vector<16x1xf32>
    %59 = vector.broadcast %58 : vector<16x1xf32> to vector<16x16xf32>
    %60 = arith.subf %56, %59 : vector<16x16xf32>
    %61 = math.exp %60 : vector<16x16xf32>
    %cst_19 = arith.constant dense<0.000000e+00> : vector<16xf32>
    %62 = vector.multi_reduction <add>, %61, %cst_19 [1] : vector<16x16xf32> to vector<16xf32>
    %63 = vector.shape_cast %62 : vector<16xf32> to vector<16x1xf32>
    %64 = vector.broadcast %63 : vector<16x1xf32> to vector<16x16xf32>
    %65 = arith.divf %61, %64 : vector<16x16xf32>
    %cst_20 = arith.constant dense<0.000000e+00> : vector<16x32xf32>
    %66 = tpu.matmul %65, %52, %cst_20 {dimension_numbers = #tpu.dot_dimension_numbers<[1], [0], [0], [1], [0, 0, 1, 1], [], []>} : vector<16x16xf32>, vector<16x32xf32>, vector<16x32xf32> -> vector<16x32xf32>
    %67 = arith.truncf %66 : vector<16x32xf32> to vector<16x32xbf16>
    %cst_21 = arith.constant dense<0.000000e+00> : vector<16x32xf32>
    %68 = tpu.matmul %67, %16, %cst_21 {dimension_numbers = #tpu.dot_dimension_numbers<[1], [0], [0], [1], [0, 0, 1, 1], [], []>} : vector<16x32xbf16>, vector<32x32xbf16>, vector<16x32xf32> -> vector<16x32xf32>
    %69 = vector.broadcast %7 : vector<1x32xf32> to vector<16x32xf32>
    %70 = arith.addf %68, %69 : vector<16x32xf32>
    %71 = arith.addf %0, %70 : vector<16x32xf32>
    %cst_22 = arith.constant dense<0.000000e+00> : vector<16xf32>
    %72 = vector.multi_reduction <add>, %71, %cst_22 [1] : vector<16x32xf32> to vector<16xf32>
    %73 = vector.shape_cast %72 : vector<16xf32> to vector<16x1xf32>
    %cst_23 = arith.constant 3.200000e+01 : f32
    %74 = vector.broadcast %cst_23 : f32 to vector<16x1xf32>
    %75 = arith.divf %73, %74 : vector<16x1xf32>
    %76 = vector.broadcast %75 : vector<16x1xf32> to vector<16x32xf32>
    %77 = arith.subf %71, %76 : vector<16x32xf32>
    %78 = arith.mulf %77, %77 : vector<16x32xf32>
    %cst_24 = arith.constant dense<0.000000e+00> : vector<16xf32>
    %79 = vector.multi_reduction <add>, %78, %cst_24 [1] : vector<16x32xf32> to vector<16xf32>
    %80 = vector.shape_cast %79 : vector<16xf32> to vector<16x1xf32>
    %cst_25 = arith.constant 3.200000e+01 : f32
    %81 = vector.broadcast %cst_25 : f32 to vector<16x1xf32>
    %82 = arith.divf %80, %81 : vector<16x1xf32>
    %83 = vector.broadcast %75 : vector<16x1xf32> to vector<16x32xf32>
    %84 = arith.subf %71, %83 : vector<16x32xf32>
    %cst_26 = arith.constant 9.99999974E-6 : f32
    %85 = vector.broadcast %cst_26 : f32 to vector<16x1xf32>
    %86 = arith.addf %82, %85 : vector<16x1xf32>
    %87 = math.rsqrt %86 : vector<16x1xf32>
    %88 = vector.broadcast %87 : vector<16x1xf32> to vector<16x32xf32>
    %89 = arith.mulf %84, %88 : vector<16x32xf32>
    %90 = vector.broadcast %10 : vector<1x32xf32> to vector<16x32xf32>
    %91 = arith.mulf %89, %90 : vector<16x32xf32>
    %92 = vector.broadcast %11 : vector<1x32xf32> to vector<16x32xf32>
    %93 = arith.addf %91, %92 : vector<16x32xf32>
    %94 = arith.truncf %93 : vector<16x32xf32> to vector<16x32xbf16>
    %cst_27 = arith.constant dense<0.000000e+00> : vector<16x64xf32>
    %95 = tpu.matmul %94, %17, %cst_27 {dimension_numbers = #tpu.dot_dimension_numbers<[1], [0], [0], [1], [0, 0, 1, 1], [], []>} : vector<16x32xbf16>, vector<32x64xbf16>, vector<16x64xf32> -> vector<16x64xf32>
    %96 = vector.broadcast %12 : vector<1x64xf32> to vector<16x64xf32>
    %97 = arith.addf %95, %96 : vector<16x64xf32>
    %cst_28 = arith.constant 5.000000e-01 : f32
    %98 = vector.broadcast %cst_28 : f32 to vector<16x64xf32>
    %99 = arith.mulf %98, %97 : vector<16x64xf32>
    %cst_29 = arith.constant 4.471500e-02 : f32
    %100 = vector.broadcast %cst_29 : f32 to vector<16x64xf32>
    %101 = arith.mulf %100, %97 : vector<16x64xf32>
    %102 = arith.mulf %101, %97 : vector<16x64xf32>
    %103 = arith.mulf %102, %97 : vector<16x64xf32>
    %104 = arith.addf %97, %103 : vector<16x64xf32>
    %cst_30 = arith.constant 0.797884583 : f32
    %105 = vector.broadcast %cst_30 : f32 to vector<16x64xf32>
    %106 = arith.mulf %105, %104 : vector<16x64xf32>
    %107 = math.tanh %106 : vector<16x64xf32>
    %cst_31 = arith.constant 1.000000e+00 : f32
    %108 = vector.broadcast %cst_31 : f32 to vector<16x64xf32>
    %109 = arith.addf %108, %107 : vector<16x64xf32>
    %110 = arith.mulf %99, %109 : vector<16x64xf32>
    %111 = arith.truncf %110 : vector<16x64xf32> to vector<16x64xbf16>
    %cst_32 = arith.constant dense<0.000000e+00> : vector<16x32xf32>
    %112 = tpu.matmul %111, %19, %cst_32 {dimension_numbers = #tpu.dot_dimension_numbers<[1], [0], [0], [1], [0, 0, 1, 1], [], []>} : vector<16x64xbf16>, vector<64x32xbf16>, vector<16x32xf32> -> vector<16x32xf32>
    %113 = vector.broadcast %13 : vector<1x32xf32> to vector<16x32xf32>
    %114 = arith.addf %112, %113 : vector<16x32xf32>
    %115 = arith.addf %71, %114 : vector<16x32xf32>
    %cst_33 = arith.constant dense<0.000000e+00> : vector<8xf32>
    %116 = vector.multi_reduction <add>, %2, %cst_33 [1] : vector<8x16xf32> to vector<8xf32>
    %117 = vector.shape_cast %116 : vector<8xf32> to vector<8x1xf32>
    %cst_34 = arith.constant 9.99999971E-10 : f32
    %118 = vector.broadcast %cst_34 : f32 to vector<8x1xf32>
    %119 = arith.maximumf %117, %118 : vector<8x1xf32>
    %cst_35 = arith.constant dense<0.000000e+00> : vector<8x32xf32>
    %120 = tpu.matmul %2, %115, %cst_35 {dimension_numbers = #tpu.dot_dimension_numbers<[1], [0], [0], [1], [0, 0, 1, 1], [], []>} : vector<8x16xf32>, vector<16x32xf32>, vector<8x32xf32> -> vector<8x32xf32>
    %121 = vector.broadcast %119 : vector<8x1xf32> to vector<8x32xf32>
    %122 = arith.divf %120, %121 : vector<8x32xf32>
    %123 = arith.truncf %122 : vector<8x32xf32> to vector<8x32xbf16>
    %cst_36 = arith.constant dense<0.000000e+00> : vector<8x128xf32>
    %124 = tpu.matmul %123, %18, %cst_36 {dimension_numbers = #tpu.dot_dimension_numbers<[1], [0], [0], [1], [0, 0, 1, 1], [], []>} : vector<8x32xbf16>, vector<32x128xbf16>, vector<8x128xf32> -> vector<8x128xf32>
    %125 = vector.broadcast %14 : vector<1x128xf32> to vector<8x128xf32>
    %126 = arith.addf %124, %125 : vector<8x128xf32>
    %c0_37 = arith.constant 0 : index
    %c0_38 = arith.constant 0 : index
    %127 = vector.load %arg3[%c0_37, %c0_38] : memref<8x128xf32, #tpu.memory_space<vmem>>, vector<8x128xf32>
    tpu.vector_store %arg3[%c0_37, %c0_38], %126 {strides = array<i32>} : memref<8x128xf32, #tpu.memory_space<vmem>>, vector<8x128xf32>,
    return
  }
}

</mosaic_0001>

<bundles_post_ra>
// kernel: feedback_forward.1
= control target key start
LH: loop header
LB: loop body
LE: loop exit
PB: predicated region body
PF: predicated region fallthrough
CT: control target
= control target key end

     0   :  { %vm50_vm0 = vcmask 261120   ;;  %v988_v15 = vmov 0.0   ;;  %v989_v16 = vmov 0   ;;  %vm990_vm1 = vmmov 0   ;;  %s1193_s0 = inlined_call_operand.vmem [shape: f32[16,32], index: 0, kind: input, shape index: {}]   ;;  %s1194_s2 = inlined_call_operand.vmem [shape: bf16[128,384], index: 2, kind: input, shape index: {}]   ;;  %s1195_s1 = inlined_call_operand.vmem [shape: f32[40,128], index: 1, kind: input, shape index: {}]   ;;  %s1196_s3 = inlined_call_operand.vmem [shape: f32[8,128], index: 3, kind: output, shape index: {}]  }
   0x1   :  { %v1014_v0 = vld [vmem:[%s1193_s0] sm:$0xff]  ;;  %v1019_v1 = vld [vmem:[%s1193_s0 + $0x8] sm:$0xff]  ;;  %880 = vmatprep.subr.bf16.mxu1 %v988_v15  ;;  %158 = vmatprep.mubr.bf16.mxu0 %v989_v16  ;;  %v78_v28 = vlaneseq  ;;  %v1057_v31 = vld [vmem:[%s1195_s1 + $0x18] sm:$0xff]  ;;  %vm319_vm2 = vcmask 130048   ;;  %vm632_vm3 = vcmask 523264  }
   0x2   :  { %v51_v2 = vsel %vm50_vm0, %v1014_v0, 0.0  ;;  %v54_v3 = vsel %vm50_vm0, %v1019_v1, 0.0  ;;  %v948_v14 = vld [vmem:[%s1194_s2 + $0x1c] ss:$12 sps:$4 sm:$0xff]   ;;  %v950_v17 = vld [vmem:[%s1194_s2 + $0x18] ss:$12 sps:$4 sm:$0xff]   ;;  %884 = vmatprep.mubr.msk.bf16.mxu1 %vm990_vm1, %v988_v15 }
   0x3   :  { %52 = vadd.xlane.f32.xlu0 %v51_v2  ;;  %138 = vmatprep.subr.bf16.mxu0 %v948_v14  ;;  %v951_v18 = vld [vmem:[%s1194_s2 + $0x20] ss:$12 sps:$4 sm:$0xff]   ;;  %v952_v19 = vld [vmem:[%s1194_s2 + $0x4] ss:$12 sps:$4 sm:$0xff]   ;;  %v955_v21 = vld [vmem:[%s1194_s2 + $0x8] ss:$12 sps:$4 sm:$0xff]  }
   0x4   :  { %139 = vmatpush1.bf16.msra.mxu0 %v950_v17  ;;  %v954_v20 = vld [vmem:[%s1194_s2] ss:$12 sps:$4 sm:$0xff]   ;;  %881 = vmatpush3.bf16.msra.mxu1 %v951_v18  ;;  %v1051_v29 = vshrl.u32 %v78_v28, 7 }
   0x5   :  { %140 = vmatprep.subr.bf16.mxu0 %v952_v19  ;;  %882 = vmatprep.subr.bf16.mxu1 %v988_v15 }
   0x6   :  { %v80_v30 = vsub.s32 4, %v1051_v29  ;;  %v86_v35 = vsub.s32 5, %v1051_v29  ;;  %v212_v44 = vsub.s32 0, %v1051_v29  ;;  %v224_v46 = vsub.s32 2, %v1051_v29 }
   0x7   :  { %55 = vadd.xlane.f32.xlu0 %v54_v3  ;;  %v218_v50 = vsub.s32 1, %v1051_v29  ;;  %v18_v3 = vld [vmem:[%s1195_s1 + $0x8] sm:$0xff] }
   0x8   :  { %141 = vmatpush1.bf16.msra.mxu0 %v954_v20  ;;  %883 = vmatpush3.bf16.msra.mxu1 %v955_v21  ;;  %v81_v34 = vrot.slane %v1057_v31, %v80_v30  ;;  %v87_v39 = vrot.slane %v1057_v31, %v86_v35  ;;  %v213_v45 = vrot.slane %v1057_v31, %v212_v44 }
   0x9   :  { %v225_v53 = vrot.slane %v1057_v31, %v224_v46  ;;  %v219_v56 = vrot.slane %v1057_v31, %v218_v50 }
  0x8c   :  { %v53_v4 = vpop.xlane.xlu0 %52 }
  0x8d   :  { %v58_v5 = vmul.f32 0.03125, %v53_v4 }
  0x8f   :  { %v60_v6 = vsub.f32 %v1014_v0, %v58_v5 }
  0x90   :  { %v56_v7 = vpop.xlane.xlu0 %55 }
  0x91   :  { %v59_v8 = vmul.f32 0.03125, %v56_v7  ;;  %v62_v9 = vmul.f32 %v60_v6, %v60_v6 }
  0x93   :  { %v61_v10 = vsub.f32 %v1019_v1, %v59_v8  ;;  %v64_v11 = vsel %vm50_vm0, %v62_v9, 0.0 }
  0x94   :  { %65 = vadd.xlane.f32.xlu1 %v64_v11 }
  0x95   :  { %v63_v12 = vmul.f32 %v61_v10, %v61_v10 }
  0x97   :  { %v67_v13 = vsel %vm50_vm0, %v63_v12, 0.0 }
  0x98   :  { %68 = vadd.xlane.f32.xlu1 %v67_v13 }
 0x11d   :  { %v66_v22 = vpop.xlane.xlu1 %65 }
 0x11e   :  { %v70_v23 = vmul.f32 0.03125, %v66_v22 }
 0x120   :  { %v72_v24 = vadd.f32 1e-05, %v70_v23  ;;  %v956_v23 = vld [vmem:[%s1194_s2 + $0x48] ss:$12 sps:$4 sm:$0xff]  }
 0x121   :  { %v69_v25 = vpop.xlane.xlu1 %68 }
 0x122   :  { %966 = vrsqrt.f32 %v72_v24  ;;  %v71_v26 = vmul.f32 0.03125, %v69_v25 }
 0x124   :  { %v73_v27 = vadd.f32 1e-05, %v71_v26 }
 0x126   :  { %968 = vrsqrt.f32 %v73_v27 }
 0x12f   :  { %v967_v32 = vpop.eup %966 }
 0x130   :  { %v76_v33 = vmul.f32 %v967_v32, %v60_v6  ;;  %v17_v6 = vld [vmem:[%s1195_s1] sm:$0xff]  ;;  %v957_v32 = vld [vmem:[%s1194_s2 + $0x30] ss:$12 sps:$4 sm:$0xff]  }
 0x132   :  { %v82_v38 = vmul.f32 %v81_v34, %v76_v33 }
 0x133   :  { %v969_v36 = vpop.eup %968 }
 0x134   :  { %v77_v37 = vmul.f32 %v969_v36, %v61_v10  ;;  %v88_v41 = vadd.f32 %v87_v39, %v82_v38  ;;  %v426_v36 = vsub.s32 3, %v1051_v29 }
 0x136   :  { %v83_v40 = vmul.f32 %v81_v34, %v77_v37  ;;  %v427_v37 = vrot.slane %v1057_v31, %v426_v36 }
 0x138   :  { %v89_v42 = vadd.f32 %v87_v39, %v83_v40 }
 0x13a   :  { %v90_v43 = vpack.c.bf16 %v89_v42, %v88_v41 }
 0x13c   :  { %829 = vmatmul.mubr.msk.bf16.vlgmr.msra.gmra.mxu0 %vm50_vm0, %v90_v43  ;;  %885 = vmatmul.mubr.msk.bf16.vlgmr.msra.gmra.mxu1 %vm50_vm0, %v90_v43 }
 0x1fc   :  { %v160_v47 = vpop.f32.mrf.mxu0  ;;  %v203_v48 = vpop.f32.mrf.mxu1 }
 0x1fd   :  { %v214_v49 = vadd.f32 %v213_v45, %v160_v47  ;;  %v226_v60 = vadd.f32 %v225_v53, %v203_v48 }
 0x1fe   :  { %v162_v51 = vpop.f32.mrf.mxu0  ;;  %v886_v52 = vpop.f32.mrf.mxu1 }
 0x1ff   :  { %892 = vmatprep.mubr.msk.f32.mxu0 %vm50_vm0, %v214_v49  ;;  %v220_v62 = vadd.f32 %v219_v56, %v162_v51 }
 0x200   :  { %v164_v54 = vpop.f32.mrf.mxu0  ;;  %v206_v55 = vpop.f32.mrf.mxu1 }
 0x201   :  { %v227_v57 = vadd.f32 %v225_v53, %v206_v55  ;;  %v215_v63 = vadd.f32 %v213_v45, %v164_v54 }
 0x202   :  { %v166_v58 = vpop.f32.mrf.mxu0  ;;  %v887_v59 = vpop.f32.mrf.mxu1 }
 0x203   :  { %v221_v61 = vadd.f32 %v219_v56, %v166_v58  ;;  %895 = vmatprep.subr.mxu1 %v227_v57  ;;  %v958_v59 = vld [vmem:[%s1194_s2 + $0x4c] ss:$12 sps:$4 sm:$0xff]  }
 0x204   :  { %896 = vmatpush3.msra.mxu1 %v227_v57 }
 0x205   :  { %888 = vmatprep.subr.msk.mxu0 %vm50_vm0, %v221_v61  ;;  %897 = vmatprep.subr.mxu1 %v226_v60 }
 0x206   :  { %889 = vmatpush3.xpose.msk.msra.mxu0 %vm50_vm0, %v221_v61  ;;  %898 = vmatpush3.msra.mxu1 %v226_v60  ;;  %v959_v60 = vld [vmem:[%s1194_s2 + $0x34] ss:$12 sps:$4 sm:$0xff]  }
 0x207   :  { %890 = vmatprep.subr.msk.mxu0 %vm50_vm0, %v220_v62  ;;  %910 = vmatprep.subr.bf16.mxu1 %v988_v15 }
 0x20a   :  { %891 = vmatpush3.xpose.msk.msra.mxu0 %vm50_vm0, %v220_v62 }
 0x20b   :  { %902 = vmatprep.subr.bf16.mxu0 %v988_v15 }
 0x20d   :  { %893 = vmatmul.mubr.msk.f32.vlgmr.msra.gmra.mxu0 %vm50_vm0, %v215_v63 }
 0x20e   :  { %906 = vmatprep.mubr.msk.bf16.mxu0 %vm990_vm1, %v988_v15  ;;  %903 = vmatpush3.bf16.msra.mxu0 %v956_v23 }
 0x20f   :  { %904 = vmatprep.subr.bf16.mxu0 %v988_v15 }
 0x212   :  { %905 = vmatpush3.bf16.msra.mxu0 %v957_v32 }
 0x213   :  { %918 = vmatprep.subr.bf16.mxu0 %v988_v15 }
 0x2cd   :  { %v894_v2 = vpop.f32.mrf.mxu0 }
 0x2ce   :  { %v316_v4 = vmul.f32 0.17677669, %v894_v2 }
 0x2cf   :  { %v306_v5 = vpop.f32.mrf.mxu0 }
 0x2d0   :  { %v315_v7 = vmul.f32 0.17677669, %v306_v5  ;;  %v318_v8 = vadd.f32 %v316_v4, %v18_v3  ;;  %v514_v5 = vsub.s32 6, %v1051_v29 }
 0x2d2   :  { %v323_v9 = vsel %vm319_vm2, %v318_v8, -inf  ;;  %v317_v10 = vadd.f32 %v315_v7, %v17_v6 }
 0x2d3   :  { %324 = vmax.xlane.f32.xlu1 %v323_v9  ;;  %v520_v9 = vsub.s32 7, %v1051_v29 }
 0x2d4   :  { %v320_v11 = vsel %vm319_vm2, %v317_v10, -inf }
 0x2d5   :  { %321 = vmax.xlane.f32.xlu0 %v320_v11 }
 0x35c   :  { %v325_v12 = vpop.xlane.xlu1 %324 }
 0x35d   :  { %v327_v13 = vsub.f32 %v318_v8, %v325_v12  ;;  %v515_v8 = vrot.slane %v1057_v31, %v514_v5 }
 0x35e   :  { %v322_v14 = vpop.xlane.xlu0 %321 }
 0x35f   :  { %v330_v16 = vmul.f32 1.442695, %v327_v13  ;;  %v326_v17 = vsub.f32 %v317_v10, %v322_v14  ;;  %v521_v13 = vrot.slane %v1057_v31, %v520_v9  ;;  %v962_v31 = vld [vmem:[%s1194_s2 + $0x78] ss:$12 sps:$4 sm:$0xff]  }
 0x361   :  { %970 = vpow2.f32 %v330_v16  ;;  %v328_v18 = vmul.f32 1.442695, %v326_v17 }
 0x363   :  { %972 = vpow2.f32 %v328_v18 }
 0x36e   :  { %v971_v19 = vpop.eup %970 }
 0x36f   :  { %v335_v20 = vsel %vm319_vm2, %v971_v19, 0.0 }
 0x370   :  { %v973_v21 = vpop.eup %972  ;;  %336 = vadd.xlane.f32.xlu1 %v335_v20  ;;  %v961_v20 = vld [vmem:[%s1194_s2 + $0x90] ss:$12 sps:$4 sm:$0xff]  }
 0x371   :  { %v332_v22 = vsel %vm319_vm2, %v973_v21, 0.0 }
 0x372   :  { %333 = vadd.xlane.f32.xlu0 %v332_v22  ;;  %v1160_v22 = vld [vmem:[%s1195_s1 + $0x20] sm:$0xff] }
 0x373   :  { %v528_v23 = vrot.slane %v1160_v22, %v212_v44 }
 0x3f9   :  { %v337_v24 = vpop.xlane.xlu1 %336 }
 0x3fa   :  { %974 = vrcp.f32 %v337_v24 }
 0x3fb   :  { %v334_v25 = vpop.xlane.xlu0 %333 }
 0x3fc   :  { %976 = vrcp.f32 %v334_v25 }
 0x407   :  { %v975_v26 = vpop.eup %974 }
 0x408   :  { %v341_v30 = vmul.f32 %v975_v26, %v971_v19  ;;  %v960_v19 = vld [vmem:[%s1194_s2 + $0xa8] ss:$12 sps:$4 sm:$0xff]  }
 0x409   :  { %v977_v27 = vpop.eup %976 }
 0x40a   :  { %v339_v28 = vmul.f32 %v977_v27, %v973_v21  ;;  %v963_v21 = vld [vmem:[%s1194_s2 + $0x60] ss:$12 sps:$4 sm:$0xff]  }
 0x40c   :  { %899 = vmatprep.mubr.msk.f32.mxu1 %vm319_vm2, %v339_v28 }
 0x40d   :  { %900 = vmatmul.mubr.msk.f32.vlgmr.msra.gmra.mxu1 %vm319_vm2, %v341_v30 }
 0x40e   :  { %914 = vmatprep.mubr.msk.bf16.mxu1 %vm990_vm1, %v988_v15  ;;  %911 = vmatpush3.bf16.msra.mxu1 %v958_v59 }
 0x40f   :  { %912 = vmatprep.subr.bf16.mxu1 %v988_v15 }
 0x412   :  { %913 = vmatpush3.bf16.msra.mxu1 %v959_v60 }
 0x413   :  { %930 = vmatprep.subr.mxu1 %v988_v15 }
 0x4cd   :  { %v901_v33 = vpop.f32.mrf.mxu1 }
 0x4cf   :  { %v414_v34 = vpop.f32.mrf.mxu1 }
 0x4d0   :  { %v423_v35 = vpack.c.bf16 %v901_v33, %v414_v34 }
 0x4d2   :  { %907 = vmatmul.mubr.msk.bf16.vlgmr.msra.gmra.mxu0 %vm50_vm0, %v423_v35 }
 0x4d3   :  { %926 = vmatprep.mubr.msk.bf16.mxu0 %vm990_vm1, %v988_v15  ;;  %919 = vmatpush3.bf16.msra.mxu0 %v960_v19 }
 0x4d4   :  { %920 = vmatprep.subr.bf16.mxu0 %v988_v15 }
 0x4d7   :  { %921 = vmatpush3.bf16.msra.mxu0 %v961_v20 }
 0x4d8   :  { %922 = vmatprep.subr.bf16.mxu0 %v988_v15 }
 0x4db   :  { %923 = vmatpush3.bf16.msra.mxu0 %v962_v31 }
 0x4dc   :  { %924 = vmatprep.subr.bf16.mxu0 %v988_v15 }
 0x4df   :  { %925 = vmatpush3.bf16.msra.mxu0 %v963_v21 }
 0x592   :  { %v477_v38 = vpop.f32.mrf.mxu0 }
 0x593   :  { %v478_v39 = vadd.f32 %v477_v38, %v427_v37 }
 0x594   :  { %v908_v40 = vpop.f32.mrf.mxu0 }
 0x595   :  { %v1114_v41 = vadd.f32 %v478_v39, %v1014_v0 }
 0x596   :  { %v480_v42 = vpop.f32.mrf.mxu0 }
 0x597   :  { %v481_v43 = vadd.f32 %v480_v42, %v427_v37  ;;  %v486_v45 = vsel %vm50_vm0, %v1114_v41, 0.0 }
 0x598   :  { %487 = vadd.xlane.f32.xlu0 %v486_v45  ;;  %v909_v47 = vpop.f32.mrf.mxu0 }
 0x599   :  { %v1119_v48 = vadd.f32 %v481_v43, %v1019_v1 }
 0x59b   :  { %v489_v49 = vsel %vm50_vm0, %v1119_v48, 0.0 }
 0x59c   :  { %490 = vadd.xlane.f32.xlu1 %v489_v49 }
 0x621   :  { %v488_v51 = vpop.xlane.xlu0 %487 }
 0x622   :  { %v492_v52 = vmul.f32 0.03125, %v488_v51 }
 0x624   :  { %v494_v53 = vsub.f32 %v1114_v41, %v492_v52 }
 0x625   :  { %v491_v0 = vpop.xlane.xlu1 %490 }
 0x626   :  { %v493_v54 = vmul.f32 0.03125, %v491_v0  ;;  %v496_v55 = vmul.f32 %v494_v53, %v494_v53 }
 0x628   :  { %v495_v56 = vsub.f32 %v1119_v48, %v493_v54  ;;  %v498_v57 = vsel %vm50_vm0, %v496_v55, 0.0  ;;  %v19_v54 = vld [vmem:[%s1195_s1 + $0x10] sm:$0xff] }
 0x629   :  { %499 = vadd.xlane.f32.xlu0 %v498_v57  ;;  %v679_v55 = vsel %vm319_vm2, %v19_v54, 0.0  ;;  %v607_v57 = vrot.slane %v1160_v22, %v218_v50  ;;  %v965_v50 = vld [vmem:[%s1194_s2 + $0x38] ss:$12 sps:$4 sm:$0xff]  }
 0x62a   :  { %v497_v58 = vmul.f32 %v495_v56, %v495_v56 }
 0x62c   :  { %v501_v1 = vsel %vm50_vm0, %v497_v58, 0.0 }
 0x62d   :  { %502 = vadd.xlane.f32.xlu1 %v501_v1  ;;  %680 = vadd.xlane.f32.xlu0 %v679_v55 }
 0x6b2   :  { %v500_v61 = vpop.xlane.xlu0 %499 }
 0x6b3   :  { %v504_v62 = vmul.f32 0.03125, %v500_v61 }
 0x6b5   :  { %v506_v63 = vadd.f32 1e-05, %v504_v62 }
 0x6b6   :  { %v503_v2 = vpop.xlane.xlu1 %502 }
 0x6b7   :  { %978 = vrsqrt.f32 %v506_v63  ;;  %v505_v3 = vmul.f32 0.03125, %v503_v2  ;;  %v964_v2 = vld [vmem:[%s1194_s2 + $0x50] ss:$12 sps:$4 sm:$0xff]  }
 0x6b9   :  { %v507_v4 = vadd.f32 1e-05, %v505_v3 }
 0x6bb   :  { %980 = vrsqrt.f32 %v507_v4 }
 0x6c4   :  { %v979_v6 = vpop.eup %978 }
 0x6c5   :  { %v510_v7 = vmul.f32 %v979_v6, %v494_v53 }
 0x6c7   :  { %v516_v12 = vmul.f32 %v515_v8, %v510_v7 }
 0x6c8   :  { %v981_v10 = vpop.eup %980 }
 0x6c9   :  { %v511_v11 = vmul.f32 %v981_v10, %v495_v56  ;;  %v522_v16 = vadd.f32 %v521_v13, %v516_v12 }
 0x6cb   :  { %v517_v14 = vmul.f32 %v515_v8, %v511_v11  ;;  %v762_v8 = vrot.slane %v1160_v22, %v224_v46 }
 0x6cd   :  { %v523_v17 = vadd.f32 %v521_v13, %v517_v14 }
 0x6cf   :  { %v524_v18 = vpack.c.bf16 %v523_v17, %v522_v16 }
 0x6d1   :  { %915 = vmatmul.mubr.msk.bf16.vlgmr.msra.gmra.mxu1 %vm50_vm0, %v524_v18 }
 0x6d2   :  { %934 = vmatprep.mubr.msk.f32.mxu1 %vm990_vm1, %v988_v15 }
 0x791   :  { %v578_v24 = vpop.f32.mrf.mxu1 }
 0x792   :  { %v579_v25 = vadd.f32 %v578_v24, %v528_v23 }
 0x793   :  { %v916_v26 = vpop.f32.mrf.mxu1 }
 0x794   :  { %v587_v27 = vmul.f32 0.044715, %v579_v25  ;;  %v585_v47 = vmul.f32 0.5, %v579_v25 }
 0x795   :  { %v581_v28 = vpop.f32.mrf.mxu1 }
 0x796   :  { %v589_v30 = vmul.f32 %v587_v27, %v579_v25  ;;  %v582_v32 = vadd.f32 %v581_v28, %v528_v23 }
 0x797   :  { %v917_v33 = vpop.f32.mrf.mxu1 }
 0x798   :  { %v591_v34 = vmul.f32 %v589_v30, %v579_v25  ;;  %v588_v35 = vmul.f32 0.044715, %v582_v32  ;;  %v586_v49 = vmul.f32 0.5, %v582_v32 }
 0x79a   :  { %v593_v36 = vadd.f32 %v591_v34, %v579_v25  ;;  %v590_v37 = vmul.f32 %v588_v35, %v582_v32 }
 0x79c   :  { %v595_v38 = vmul.f32 0.7978846, %v593_v36  ;;  %v592_v39 = vmul.f32 %v590_v37, %v582_v32 }
 0x79e   :  { %982 = vtanh.f32 %v595_v38  ;;  %v594_v40 = vadd.f32 %v592_v39, %v582_v32 }
 0x7a0   :  { %v596_v42 = vmul.f32 0.7978846, %v594_v40 }
 0x7a2   :  { %984 = vtanh.f32 %v596_v42 }
 0x7ab   :  { %v983_v43 = vpop.eup %982 }
 0x7ac   :  { %v599_v44 = vadd.f32 1.0, %v983_v43 }
 0x7ae   :  { %v601_v52 = vmul.f32 %v599_v44, %v585_v47 }
 0x7af   :  { %v985_v45 = vpop.eup %984 }
 0x7b0   :  { %v600_v51 = vadd.f32 1.0, %v985_v45 }
 0x7b2   :  { %v602_v53 = vmul.f32 %v600_v51, %v586_v49 }
 0x7b4   :  { %v603_v0 = vpack.c.bf16 %v602_v53, %v601_v52 }
 0x7b6   :  { %927 = vmatmul.mubr.msk.bf16.vlgmr.msra.gmra.mxu0 %vm632_vm3, %v603_v0 }
 0x876   :  { %v670_v56 = vpop.f32.mrf.mxu0 }
 0x877   :  { %v671_v59 = vadd.f32 %v670_v56, %v607_v57 }
 0x878   :  { %v928_v58 = vpop.f32.mrf.mxu0 }
 0x879   :  { %v677_v63 = vadd.f32 %v671_v59, %v1114_v41  ;;  %v681_v41 = vpop.xlane.xlu0 %680 }
 0x87a   :  { %v673_v1 = vpop.f32.mrf.mxu0 }
 0x87b   :  { %v674_v60 = vadd.f32 %v673_v1, %v607_v57 }
 0x87c   :  { %v929_v61 = vpop.f32.mrf.mxu0 }
 0x87d   :  { %v678_v62 = vadd.f32 %v674_v60, %v1119_v48  ;;  %v682_v48 = vmax.f32 %v681_v41, 1e-09 }
 0x87f   :  { %931 = vmatpush3.msra.mxu1 %v678_v62  ;;  %986 = vrcp.f32 %v682_v48 }
 0x880   :  { %932 = vmatprep.subr.mxu1 %v988_v15 }
 0x881   :  { %933 = vmatpush3.msra.mxu1 %v677_v63 }
 0x882   :  { %935 = vmatmul.mubr.msk.f32.vlgmr.msra.gmra.mxu1 %vm319_vm2, %v19_v54  ;;  %937 = vmatprep.subr.bf16.mxu1 %v988_v15 }
 0x883   :  { %938 = vmatpush3.bf16.msra.mxu1 %v964_v2  ;;  %941 = vmatprep.mubr.msk.bf16.mxu1 %vm990_vm1, %v988_v15 }
 0x884   :  { %939 = vmatprep.subr.bf16.mxu1 %v988_v15 }
 0x887   :  { %940 = vmatpush3.bf16.msra.mxu1 %v965_v50 }
 0x88c   :  { %v987_v3 = vpop.eup %986 }
 0x942   :  { %v752_v4 = vpop.f32.mrf.mxu1 }
 0x943   :  { %v757_v5 = vmul.f32 %v987_v3, %v752_v4 }
 0x944   :  { %v936_v6 = vpop.f32.mrf.mxu1 }
 0x945   :  { %v758_v7 = vpack.c.bf16 %v757_v5, %v757_v5 }
 0x947   :  { %942 = vmatmul.mubr.msk.bf16.vlgmr.msra.gmra.mxu1 %vm50_vm0, %v758_v7 }
 0xa07   :  { %v812_v15 = vpop.f32.mrf.mxu1 }
 0xa08   :  { %v813_v9 = vadd.f32 %v812_v15, %v762_v8 }
 0xa09   :  { %v943_v10 = vpop.f32.mrf.mxu1 }
 0xa0a   :  { %818 = vst [vmem:[%s1196_s3] sm:$0xff] %v813_v9 }
 0xa0b   :  { %v815_v11 = vpop.f32.mrf.mxu1 }
 0xa0d   :  { %v944_v12 = vpop.f32.mrf.mxu1 }

</bundles_post_ra>
